<compile_context>
chip_gen: v6e
topology: v6e:2x2x1
jax: 0.10.0
libtpu: 0.0.40
codegen_flags: <defaults>
</compile_context>

<pallas_src>
import jax
import jax.numpy as jnp
from jax.experimental import pallas as pl
from jax.experimental.pallas import tpu as pltpu


# ---------------------------------------------------------------------------
# Kernel
# ---------------------------------------------------------------------------
def mlp_kernel(x_ref, w1_ref, b1_ref, w2_ref, b2_ref, o_ref):
    # Cast x inside the kernel (no separate XLA cast pass over x in HBM).
    x = x_ref[...].astype(jnp.bfloat16)
    w1 = w1_ref[...].astype(jnp.bfloat16)          # no-op when params are prepped
    # fc1: bf16 operands, f32 accumulation on the MXU.
    h = jnp.dot(x, w1, preferred_element_type=jnp.float32)
    # Bias add + ReLU in f32.
    h = jnp.maximum(h + b1_ref[...].astype(jnp.float32), 0.0)
    # fc2: cast only the matmul operand to bf16; accumulate in f32.
    w2 = w2_ref[...].astype(jnp.bfloat16)
    out = jnp.dot(h.astype(jnp.bfloat16), w2, preferred_element_type=jnp.float32)
    o_ref[...] = (out + b2_ref[...].astype(jnp.float32)).astype(o_ref.dtype)


# ---------------------------------------------------------------------------
# Helpers
# ---------------------------------------------------------------------------
def _round_up(n, m):
    return ((n + m - 1) // m) * m


def _vmem_tile_bytes(shape, dtype):
    """Approx VMEM footprint of a 2-D tile after (sublane, lane) padding."""
    r, c = shape
    itemsize = jnp.dtype(dtype).itemsize
    sublane = 8 * (4 // itemsize) if itemsize < 4 else 8   # bf16 packs 16 rows
    return _round_up(max(r, 1), sublane) * _round_up(max(c, 1), 128) * itemsize


def _default_tile_b(B):
    """Batch tile: big tiles (fewer grid steps), but >=2 steps for v7x's 2 TCs."""
    if B < 512:
        # Small batch: a single tile; splitting only adds per-step overhead.
        return _round_up(max(B, 8), 8)
    # Large batch: at least 2 grid steps (megacore), tile capped at 2048 rows.
    n_steps = max(2, pl.cdiv(B, 2048))
    return _round_up(pl.cdiv(B, n_steps), 8)


def prepare_params(w1, b1, w2, b2):
    """One-time conversion to kernel-ready layout (do this at init, not per call):
    bf16 weights stored (in_features, out_features), f32 biases stored (1, out)."""
    return (jnp.asarray(w1, jnp.bfloat16),
            jnp.asarray(b1, jnp.float32).reshape(1, -1),
            jnp.asarray(w2, jnp.bfloat16),
            jnp.asarray(b2, jnp.float32).reshape(1, -1))


# ---------------------------------------------------------------------------
# Wrapper
# ---------------------------------------------------------------------------
def mlp_forward(x, w1, b1, w2, b2, *, tile_b=None, out_dtype=None):
    """x: (B, D_in); w1: (D_in, H); b1: (1, H); w2: (H, C); b2: (1, C).

    Returns relu(x @ w1 + b1) @ w2 + b2 with shape (B, C).
    Matmuls run with bf16 operands on the MXU and f32 accumulation.
    Pass params through `prepare_params` once so no per-call conversion happens.
    Set out_dtype=jnp.bfloat16 to halve the output writeback if the consumer allows.
    """
    B, D_in = x.shape
    H = w1.shape[1]
    C = w2.shape[1]
    out_dtype = x.dtype if out_dtype is None else out_dtype

    if tile_b is None:
        tile_b = _default_tile_b(B)
    else:
        tile_b = max(8, _round_up(tile_b, 8))

    grid = (pl.cdiv(B, tile_b),)   # partial last block handled by Pallas (masked store)

    # VMEM budget: double-buffered x/out tiles + resident weights/biases (counted
    # x2 for the pipeline's buffer allocation), 2x headroom, capped at 48 MiB
    # (safe on v7x's 64 MiB physical VMEM) but never below the computed need.
    vmem_need = 2 * (
        _vmem_tile_bytes((tile_b, D_in), x.dtype)
        + _vmem_tile_bytes((tile_b, C), out_dtype)
        + _vmem_tile_bytes((D_in, H), w1.dtype)
        + _vmem_tile_bytes((H, C), w2.dtype)
        + _vmem_tile_bytes((1, H), b1.dtype)
        + _vmem_tile_bytes((1, C), b2.dtype)
    )
    vmem_limit = int(min(max(2 * vmem_need, 4 << 20), 48 << 20))
    vmem_limit = max(vmem_limit, int(vmem_need))

    cost = pl.CostEstimate(
        flops=2 * B * D_in * H + 2 * B * H * C,
        transcendentals=0,
        bytes_accessed=int(
            x.size * jnp.dtype(x.dtype).itemsize
            + w1.size * jnp.dtype(w1.dtype).itemsize
            + w2.size * jnp.dtype(w2.dtype).itemsize
            + b1.size * jnp.dtype(b1.dtype).itemsize
            + b2.size * jnp.dtype(b2.dtype).itemsize
            + B * C * jnp.dtype(out_dtype).itemsize
        ),
    )

    out = pl.pallas_call(
        mlp_kernel,
        out_shape=jax.ShapeDtypeStruct((B, C), out_dtype),
        grid_spec=pltpu.PrefetchScalarGridSpec(
            num_scalar_prefetch=0,
            grid=grid,
            in_specs=[
                # x: one batch tile per grid step (double-buffered by the pipeline).
                pl.BlockSpec((tile_b, D_in), lambda i: (i, 0)),
                # Weights / biases: constant index_map -> resident, DMA'd once.
                pl.BlockSpec((D_in, H), lambda i: (0, 0)),
                pl.BlockSpec((1, H), lambda i: (0, 0)),
                pl.BlockSpec((H, C), lambda i: (0, 0)),
                pl.BlockSpec((1, C), lambda i: (0, 0)),
            ],
            # C unpadded: last dim equals the full array dim -> legal block, and
            # the HBM writeback is only the valid bytes (no 128-lane zero pad).
            out_specs=pl.BlockSpec((tile_b, C), lambda i: (i, 0)),
        ),
        compiler_params=pltpu.CompilerParams(
            dimension_semantics=("parallel",),   # megacore sharding on v7x
            vmem_limit_bytes=vmem_limit,
        ),
        cost_estimate=cost,
    )(x, w1, b1, w2, b2)

    return out


def init_linear_params(key, in_features, out_features, dtype=jnp.float32):
    """Matches PyTorch nn.Linear default init: U(-1/sqrt(fan_in), 1/sqrt(fan_in))."""
    kw, kb = jax.random.split(key)
    bound = 1.0 / jnp.sqrt(in_features)
    # Stored as (in_features, out_features) so the kernel does x @ W.
    w = jax.random.uniform(kw, (in_features, out_features), dtype,
                           minval=-bound, maxval=bound)
    b = jax.random.uniform(kb, (1, out_features), dtype,
                           minval=-bound, maxval=bound)
    return w, b


def _reference_bf16(x, w1, b1, w2, b2):
    """Pure-JAX reference with the same bf16-operand / f32-accumulate math."""
    h = jnp.dot(x.astype(jnp.bfloat16), w1.astype(jnp.bfloat16),
                preferred_element_type=jnp.float32) + b1.astype(jnp.float32)
    h = jnp.maximum(h, 0.0)
    return jnp.dot(h.astype(jnp.bfloat16), w2.astype(jnp.bfloat16),
                   preferred_element_type=jnp.float32) + b2.astype(jnp.float32)


if __name__ == "__main__":
    # Small shapes consistent with the module's forward: x is (batch, input_size).
    batch = 8
    input_size = 32
    hidden_size = 64
    num_classes = 16

    key = jax.random.PRNGKey(0)
    kx, k1, k2 = jax.random.split(key, 3)

    x = jax.random.normal(kx, (batch, input_size), jnp.float32)
    w1, b1 = init_linear_params(k1, input_size, hidden_size)
    w2, b2 = init_linear_params(k2, hidden_size, num_classes)

    # One-time parameter prep (bf16 weights, f32 biases) — off the per-call path.
    params = prepare_params(w1, b1, w2, b2)

    out = mlp_forward(x, *params)
    jax.block_until_ready(out)
    assert out.shape == (batch, num_classes)

    # Exact-math reference (same bf16 operands, f32 accumulation).
    ref_bf16 = _reference_bf16(x, w1, b1, w2, b2)
    assert jnp.allclose(out, ref_bf16, atol=1e-4, rtol=1e-4)
    # Loose check against the pure-f32 PyTorch-style reference
    # (bf16 MXU operands deviate slightly from f32 math; intentional).
    ref_f32 = jnp.maximum(x @ w1 + b1, 0.0) @ w2 + b2
    assert jnp.allclose(out, ref_f32, atol=5e-2, rtol=5e-2)

    # Multi-tile path with a PARTIAL last block (no wrapper-side padding of x).
    xb = jax.random.normal(kx, (300, input_size), jnp.float32)
    out_b = mlp_forward(xb, *params, tile_b=128)     # grid = 3, last tile partial
    jax.block_until_ready(out_b)
    assert out_b.shape == (300, num_classes)
    assert jnp.allclose(out_b, _reference_bf16(xb, w1, b1, w2, b2),
                        atol=1e-4, rtol=1e-4)

    # Default tiling path that yields >= 2 grid steps (v7x megacore sharding).
    xc = jax.random.normal(kx, (600, input_size), jnp.float32)
    out_c = mlp_forward(xc, *params)
    jax.block_until_ready(out_c)
    assert out_c.shape == (600, num_classes)
    assert jnp.allclose(out_c, _reference_bf16(xc, w1, b1, w2, b2),
                        atol=1e-4, rtol=1e-4)

    print("KERNEL_OK")
</pallas_src>

<mosaic_0001>
module attributes {stable_mosaic.version = 11 : i64} {
  func.func @mlp_kernel(%arg0: i32, %arg1: memref<8x32xf32, #tpu.memory_space<vmem>>, %arg2: memref<32x64xbf16, #tpu.memory_space<vmem>>, %arg3: memref<1x64xf32, #tpu.memory_space<vmem>>, %arg4: memref<64x16xbf16, #tpu.memory_space<vmem>>, %arg5: memref<1x16xf32, #tpu.memory_space<vmem>>, %arg6: memref<8x16xf32, #tpu.memory_space<vmem>>) attributes {dimension_semantics = [#tpu.dimension_semantics<parallel>], iteration_bounds = array<i64: 1>, scalar_prefetch = 0 : i64, scratch_operands = 0 : i64, tpu.core_type = #tpu.core_type<tc>, window_params = [{transform_indices = @transform_0, window_bounds = array<i64: 8, 32>}, {pipeline_mode = #tpu.pipeline_mode<synchronous>, transform_indices = @transform_1, window_bounds = array<i64: 32, 64>}, {pipeline_mode = #tpu.pipeline_mode<synchronous>, transform_indices = @transform_2, window_bounds = array<i64: 1, 64>}, {pipeline_mode = #tpu.pipeline_mode<synchronous>, transform_indices = @transform_3, window_bounds = array<i64: 64, 16>}, {pipeline_mode = #tpu.pipeline_mode<synchronous>, transform_indices = @transform_4, window_bounds = array<i64: 1, 16>}, {transform_indices = @transform_5, window_bounds = array<i64: 8, 16>}]} {
    %c0 = arith.constant 0 : index
    %c0_0 = arith.constant 0 : index
    %0 = vector.load %arg1[%c0, %c0_0] : memref<8x32xf32, #tpu.memory_space<vmem>>, vector<8x32xf32>
    %1 = arith.truncf %0 : vector<8x32xf32> to vector<8x32xbf16>
    %c0_1 = arith.constant 0 : index
    %c0_2 = arith.constant 0 : index
    %2 = vector.load %arg2[%c0_1, %c0_2] : memref<32x64xbf16, #tpu.memory_space<vmem>>, vector<32x64xbf16>
    %cst = arith.constant dense<0.000000e+00> : vector<8x64xf32>
    %3 = tpu.matmul %1, %2, %cst {dimension_numbers = #tpu.dot_dimension_numbers<[1], [0], [0], [1], [0, 0, 1, 1], [], []>} : vector<8x32xbf16>, vector<32x64xbf16>, vector<8x64xf32> -> vector<8x64xf32>
    %c0_3 = arith.constant 0 : index
    %c0_4 = arith.constant 0 : index
    %4 = vector.load %arg3[%c0_3, %c0_4] : memref<1x64xf32, #tpu.memory_space<vmem>>, vector<1x64xf32>
    %5 = vector.broadcast %4 : vector<1x64xf32> to vector<8x64xf32>
    %6 = arith.addf %3, %5 : vector<8x64xf32>
    %cst_5 = arith.constant 0.000000e+00 : f32
    %7 = vector.broadcast %cst_5 : f32 to vector<8x64xf32>
    %8 = arith.maximumf %6, %7 : vector<8x64xf32>
    %c0_6 = arith.constant 0 : index
    %c0_7 = arith.constant 0 : index
    %9 = vector.load %arg4[%c0_6, %c0_7] : memref<64x16xbf16, #tpu.memory_space<vmem>>, vector<64x16xbf16>
    %10 = arith.truncf %8 : vector<8x64xf32> to vector<8x64xbf16>
    %cst_8 = arith.constant dense<0.000000e+00> : vector<8x16xf32>
    %11 = tpu.matmul %10, %9, %cst_8 {dimension_numbers = #tpu.dot_dimension_numbers<[1], [0], [0], [1], [0, 0, 1, 1], [], []>} : vector<8x64xbf16>, vector<64x16xbf16>, vector<8x16xf32> -> vector<8x16xf32>
    %c0_9 = arith.constant 0 : index
    %c0_10 = arith.constant 0 : index
    %12 = vector.load %arg5[%c0_9, %c0_10] : memref<1x16xf32, #tpu.memory_space<vmem>>, vector<1x16xf32>
    %13 = vector.broadcast %12 : vector<1x16xf32> to vector<8x16xf32>
    %14 = arith.addf %11, %13 : vector<8x16xf32>
    %c0_11 = arith.constant 0 : index
    %c0_12 = arith.constant 0 : index
    %15 = vector.load %arg6[%c0_11, %c0_12] : memref<8x16xf32, #tpu.memory_space<vmem>>, vector<8x16xf32>
    tpu.vector_store %arg6[%c0_11, %c0_12], %14 {strides = array<i32>} : memref<8x16xf32, #tpu.memory_space<vmem>>, vector<8x16xf32>,
    return
  }
  func.func @transform_0(%arg0: i32) -> (i32, i32) {
    %c0_i32 = arith.constant 0 : i32
    %c0_i32_0 = arith.constant 0 : i32
    return %arg0, %c0_i32 : i32, i32
  }
  func.func @transform_1(%arg0: i32) -> (i32, i32) {
    %c0_i32 = arith.constant 0 : i32
    %c0_i32_0 = arith.constant 0 : i32
    %c0_i32_1 = arith.constant 0 : i32
    return %c0_i32, %c0_i32_0 : i32, i32
  }
  func.func @transform_2(%arg0: i32) -> (i32, i32) {
    %c0_i32 = arith.constant 0 : i32
    %c0_i32_0 = arith.constant 0 : i32
    %c0_i32_1 = arith.constant 0 : i32
    return %c0_i32, %c0_i32_0 : i32, i32
  }
  func.func @transform_3(%arg0: i32) -> (i32, i32) {
    %c0_i32 = arith.constant 0 : i32
    %c0_i32_0 = arith.constant 0 : i32
    %c0_i32_1 = arith.constant 0 : i32
    return %c0_i32, %c0_i32_0 : i32, i32
  }
  func.func @transform_4(%arg0: i32) -> (i32, i32) {
    %c0_i32 = arith.constant 0 : i32
    %c0_i32_0 = arith.constant 0 : i32
    %c0_i32_1 = arith.constant 0 : i32
    return %c0_i32, %c0_i32_0 : i32, i32
  }
  func.func @transform_5(%arg0: i32) -> (i32, i32) {
    %c0_i32 = arith.constant 0 : i32
    %c0_i32_0 = arith.constant 0 : i32
    return %arg0, %c0_i32 : i32, i32
  }
}

</mosaic_0001>

<bundles_post_ra>
// kernel: tpu_custom_call.1
= control target key start
LH: loop header
LB: loop body
LE: loop exit
PB: predicated region body
PF: predicated region fallthrough
CT: control target
= control target key end

     0   :  { %v261_v1 = vmov 0.0   ;;  %vm262_vm0 = vmmov 0   ;;  %vm47_vm1 = vcmask 261120   ;;  %s324_s0 = inlined_call_operand.vmem [shape: f32[8,32], index: 0, kind: input, shape index: {}]   ;;  %s325_s1 = inlined_call_operand.vmem [shape: bf16[32,64], index: 1, kind: input, shape index: {}]   ;;  %s326_s2 = inlined_call_operand.vmem [shape: f32[1,64], index: 2, kind: input, shape index: {}]   ;;  %s327_s3 = inlined_call_operand.vmem [shape: bf16[64,16], index: 3, kind: input, shape index: {}]   ;;  %s328_s4 = inlined_call_operand.vmem [shape: f32[1,16], index: 4, kind: input, shape index: {}]   ;;  %s329_s5 = inlined_call_operand.hbm [shape: f32[8,16], index: 5, kind: output, shape index: {}]  }
   0x1   :  { %v233_v0 = vld [vmem:[%s325_s1 + $0x8] sm:$0xff]   ;;  %210 = vmatprep.subr.bf16.mxu0 %v261_v1  ;;  %v234_v2 = vld [vmem:[%s325_s1] sm:$0xff]   ;;  %218 = vmatprep.subr.bf16.mxu1 %v261_v1  ;;  %v235_v4 = vld [vmem:[%s327_s3 + $0x18] sm:$0xff]  }
   0x2   :  { %211 = vmatpush3.bf16.msra.mxu0 %v233_v0  ;;  %214 = vmatprep.mubr.msk.bf16.mxu0 %vm262_vm0, %v261_v1  ;;  %v22_v3 = vld [vmem:[%s324_s0] sm:$0xff]  ;;  %v236_v5 = vld [vmem:[%s327_s3 + $0x10] sm:$0xff]  }
   0x3   :  { %212 = vmatprep.subr.bf16.mxu0 %v261_v1  ;;  %226 = vmatprep.mubr.msk.bf16.mxu1 %vm262_vm0, %v261_v1  ;;  %v23_v6 = vpack.c.bf16 %v22_v3, %v22_v3 }
   0x4   :  { %219 = vmatpush3.bf16.msra.mxu1 %v235_v4 }
   0x5   :  { %220 = vmatprep.subr.bf16.mxu1 %v261_v1 }
   0x6   :  { %213 = vmatpush3.bf16.msra.mxu0 %v234_v2 }
   0x7   :  { %10 = vsyncpa [#allocation3], 0  ;;  %v237_v7 = vld [vmem:[%s327_s3 + $0x8] sm:$0xff]   ;;  %v238_v8 = vld [vmem:[%s327_s3] sm:$0xff]   ;;  %vm132_vm2 = vcmask 523264   ;;  %s263_s9 = smov [#allocation2]  }
   0x8   :  { %221 = vmatpush3.bf16.msra.mxu1 %v236_v5  ;;  %v192_v9 = vld [vmem:[%s326_s2] ss:$0 sm:$0xff]  ;;  %s184_s3 = sshll.u32 %s263_s9, 4  ;;  %vm176_vm3 = vcmask 130048   ;;  %s185_s3 = int_to_ptr.vmem [resolvable:$true] %s184_s3 }
   0x9   :  { %215 = vmatmul.mubr.msk.bf16.vlgmr.msra.gmra.mxu0 %vm47_vm1, %v23_v6  ;;  %222 = vmatprep.subr.bf16.mxu1 %v261_v1  ;;  %v196_v17 = vld [vmem:[%s328_s4] ss:$0 sm:$0xff]  ;;  %s239_s2 = scalar_lea.vmem %s185_s3, 128  ;;  %p244_p1 = scmp.lt.s32.totalorder %s185_s3, %s185_s3 }
   0xa   :  { %p240_p0 = scmp.ne.s32.totalorder %s185_s3, %s239_s2  ;;  %p245_p2 = scmp.lt.s32.totalorder %s239_s2, %s239_s2 }
   0xc   :  { %223 = vmatpush3.bf16.msra.mxu1 %v237_v7  ;;  %p246_p3 = por %p245_p2, %p244_p1 }
   0xd   :  { %224 = vmatprep.subr.bf16.mxu1 %v261_v1 }
   0xe   :  { %p247_p4 = pnand %p246_p3, %p240_p0 }
  0x10   :  { %225 = vmatpush3.bf16.msra.mxu1 %v238_v8 }
  0xc9   :  { %v85_v10 = vpop.f32.mrf.mxu0 }
  0xca   :  { %v86_v11 = vadd.f32 %v192_v9, %v85_v10 }
  0xcb   :  { %v216_v12 = vpop.f32.mrf.mxu0 }
  0xcc   :  { %v91_v13 = vmax.f32 %v86_v11, 0.0 }
  0xcd   :  { %v88_v14 = vpop.f32.mrf.mxu0 }
  0xce   :  { %v100_v15 = vpack.c.bf16 %v91_v13, %v91_v13 }
  0xcf   :  { %v217_v16 = vpop.f32.mrf.mxu0 }
  0xd0   :  { %227 = vmatmul.mubr.msk.bf16.vlgmr.msra.gmra.mxu1 %vm132_vm2, %v100_v15 }
 0x190   :  { %v170_v18 = vpop.f32.mrf.mxu1 }
 0x191   :  { %v171_v19 = vadd.f32 %v196_v17, %v170_v18 }
 0x192   :  { %v228_v20 = vpop.f32.mrf.mxu1 }
 0x193   :  { %177 = vst.msk [vmem:[#allocation2] sm:$0xff] %vm176_vm3, %v171_v19 }
 0x194   :  { %v173_v21 = vpop.f32.mrf.mxu1 }
 0x195   :  { %250 = shalt.err (!%p247_p4)
}
 0x196   :  { %187 = dma.vmem_to_hbm [thread:$0]  %s185_s3, 128, %s329_s5, [#allocation3]   ;;  %v229_v22 = vpop.f32.mrf.mxu1 }
 0x197   :  { %259 = dma.done.wait [#allocation3], 128  }
 0x198   :  { %260 = vsyncadd [#allocation3], 4294967168 }
 0x199   :  { %191 = vsyncpa [#allocation3], 1 }

</bundles_post_ra>
